<compile_context>
chip_gen: v7x
topology: tpu7x:2x2x1
jax: 0.10.0
libtpu: 0.0.40
codegen_flags: <defaults>
</compile_context>

<pallas_src>
import jax
import jax.numpy as jnp
from jax import lax
from jax.experimental import pallas as pl
from jax.experimental.pallas import tpu as pltpu


def _round_up(x: int, m: int) -> int:
    return ((x + m - 1) // m) * m


def arma_kernel(x_ref, w_ref, b_ref, o_ref):
    # x_ref: (TB, L_in, TC)   w_ref: (2*L_out_pad, L_in)   b_ref: (2*L_out_pad, 1)
    # o_ref: (TB, L_out, TC)
    w = w_ref[...]                      # resident fused weight slab (hoisted)
    b = b_ref[...]                      # fused bias column (hoisted)
    lp = w_ref.shape[0] // 2            # padded L_out (multiple of 8 -> aligned split)
    l_out = o_ref.shape[1]
    tb = x_ref.shape[0]

    def body(i, carry):
        # (2*L_out_pad, L_in) @ (L_in, TC): channels stay on the lane axis.
        y = jnp.dot(w, x_ref[i], preferred_element_type=jnp.float32)
        y = jnp.maximum(y + b, 0.0)                      # bias bcast over lanes + ReLU
        s = y[:lp, :] + y[lp:, :]                        # sublane-aligned half split
        o_ref[i] = s[:l_out, :].astype(o_ref.dtype)      # lane-dense store
        return carry

    lax.fori_loop(0, tb, body, 0, unroll=(tb <= 8))


def arma_forward(x, w_ar, b_ar, w_ma, b_ma, *,
                 vmem_budget_bytes=24 << 20,     # streaming-buffer budget (v7x-safe)
                 target_step_bytes=1 << 20):     # aim for ~1 MiB of x per grid step
    """x: (B, input_len, C).  Returns (B, output_len, C)."""
    B, L_in, C = x.shape
    L_out = w_ar.shape[0]                            # PyTorch weight layout: (out, in)
    itemsize = jnp.dtype(x.dtype).itemsize

    # ---- Fuse the two linears; zero-pad L_out to a sublane multiple so the split
    #      of the matmul result never crosses an (8,128) tile boundary.
    L_out_pad = _round_up(L_out, 8)
    pad = L_out_pad - L_out
    if pad:
        w_ar = jnp.pad(w_ar, ((0, pad), (0, 0)))
        w_ma = jnp.pad(w_ma, ((0, pad), (0, 0)))
        b_ar = jnp.pad(b_ar, ((0, pad),))
        b_ma = jnp.pad(b_ma, ((0, pad),))
    w_cat = jnp.concatenate([w_ar, w_ma], axis=0)                      # (2*Lp, L_in)
    b_cat = jnp.concatenate([b_ar, b_ma], axis=0).reshape(2 * L_out_pad, 1)

    # ---- VMEM-aware tile selection (x up-to-triple-buffered, out double-buffered,
    #      weights resident / double-buffered).
    n_x_buf = 3
    w_bytes = 2 * int(w_cat.size + b_cat.size) * itemsize
    stream_budget = max(vmem_budget_bytes - w_bytes, 2 << 20)

    per_chan_bytes = itemsize * (n_x_buf * L_in + 2 * L_out)   # per channel, per batch row
    tc_cap = max(1, stream_budget // per_chan_bytes)
    if C <= tc_cap:
        TC = C                       # full channel dim (block == array dim is always legal)
    else:
        # near-equal 128-multiple channel tiles (no fat tile + tiny masked remainder)
        tc_cap_128 = max(128, (tc_cap // 128) * 128)
        n_c = pl.cdiv(C, tc_cap_128)
        TC = min(C, _round_up(pl.cdiv(C, n_c), 128))
    n_c_tiles = pl.cdiv(C, TC)

    # Batch tile: amortize per-grid-step overhead when L_in*C is small.
    per_batch_bytes = per_chan_bytes * TC
    tb_budget = max(1, stream_budget // per_batch_bytes)
    tb_target = max(1, pl.cdiv(target_step_bytes, itemsize * L_in * TC))
    TB = int(min(B, tb_budget, tb_target, 128))
    n_b_tiles = pl.cdiv(B, TB)
    # TODO(synk): for C << 128 with very large B, a one-time relayout to a lane-dense
    # (L_in, B*C) RHS would also avoid masked stores; kept transpose-free here.

    # ---- Grid: both axes independent -> "parallel"; longer axis first so the v7x
    #      megacore split lands on the axis with the most iterations.
    if n_c_tiles >= n_b_tiles:
        grid = (n_c_tiles, n_b_tiles)
        xo_map = lambda c, b: (b, 0, c)
        wb_map = lambda c, b: (0, 0)
    else:
        grid = (n_b_tiles, n_c_tiles)
        xo_map = lambda b, c: (b, 0, c)
        wb_map = lambda b, c: (0, 0)
    total_steps = n_c_tiles * n_b_tiles

    # Deeper pipelining on the streaming input once there are enough steps to overlap.
    if total_steps > 2:
        x_spec = pl.BlockSpec((TB, L_in, TC), xo_map, pipeline_mode=pl.Buffered(3))
    else:
        x_spec = pl.BlockSpec((TB, L_in, TC), xo_map)

    # ---- Explicit VMEM limit: enough for the chosen blocks, capped to stay safe on
    #      v7x (64 MiB physical); always >= 32 MiB so v5e's 16 MiB default is lifted.
    block_bytes = (n_x_buf * TB * L_in * TC + 2 * TB * L_out * TC) * itemsize + w_bytes
    vmem_limit = int(min(64 << 20, max(32 << 20, block_bytes * 3 // 2 + (4 << 20))))

    cost = pl.CostEstimate(
        flops=2 * B * (2 * L_out_pad) * L_in * C,
        transcendentals=0,
        bytes_accessed=itemsize * (B * L_in * C + B * L_out * C
                                   + 2 * L_out_pad * L_in + 2 * L_out_pad),
    )

    out = pl.pallas_call(
        arma_kernel,
        out_shape=jax.ShapeDtypeStruct((B, L_out, C), x.dtype),
        grid_spec=pltpu.PrefetchScalarGridSpec(
            num_scalar_prefetch=0,
            grid=grid,
            in_specs=[
                x_spec,
                pl.BlockSpec((2 * L_out_pad, L_in), wb_map),   # resident weights
                pl.BlockSpec((2 * L_out_pad, 1), wb_map),      # resident biases
            ],
            out_specs=pl.BlockSpec((TB, L_out, TC), xo_map),
        ),
        compiler_params=pltpu.CompilerParams(
            dimension_semantics=("parallel", "parallel"),
            vmem_limit_bytes=vmem_limit),
        cost_estimate=cost,
    )(x, w_cat, b_cat)

    return out


def reference_forward(x, w_ar, b_ar, w_ma, b_ma):
    xp = jnp.transpose(x, (0, 2, 1))
    ar = jax.nn.relu(xp @ w_ar.T + b_ar)
    ma = jax.nn.relu(xp @ w_ma.T + b_ma)
    return jnp.transpose(ar + ma, (0, 2, 1))


if __name__ == "__main__":
    B, input_len, output_len, C = 2, 16, 8, 4

    key = jax.random.PRNGKey(0)
    kx, k1, k2, k3, k4 = jax.random.split(key, 5)

    x = jax.random.normal(kx, (B, input_len, C), dtype=jnp.float32)

    # Deterministic init mimicking nn.Linear default: U(-1/sqrt(in), 1/sqrt(in)).
    bound = 1.0 / (input_len ** 0.5)
    w_ar = jax.random.uniform(k1, (output_len, input_len), jnp.float32, -bound, bound)
    b_ar = jax.random.uniform(k2, (output_len,), jnp.float32, -bound, bound)
    w_ma = jax.random.uniform(k3, (output_len, input_len), jnp.float32, -bound, bound)
    b_ma = jax.random.uniform(k4, (output_len,), jnp.float32, -bound, bound)

    out = arma_forward(x, w_ar, b_ar, w_ma, b_ma)
    jax.block_until_ready(out)

    ref = reference_forward(x, w_ar, b_ar, w_ma, b_ma)
    assert out.shape == (B, output_len, C)
    assert jnp.allclose(out, ref, atol=1e-5, rtol=1e-5), "mismatch vs reference"

    print("KERNEL_OK")
</pallas_src>

<mosaic_0001>
module attributes {stable_mosaic.version = 11 : i64} {
  func.func @arma_kernel(%arg0: i32, %arg1: i32, %arg2: memref<2x16x4xf32, #tpu.memory_space<vmem>>, %arg3: memref<16x16xf32, #tpu.memory_space<vmem>>, %arg4: memref<16x1xf32, #tpu.memory_space<vmem>>, %arg5: memref<2x8x4xf32, #tpu.memory_space<vmem>>) attributes {dimension_semantics = [#tpu.dimension_semantics<parallel>, #tpu.dimension_semantics<parallel>], iteration_bounds = array<i64: 1, 1>, scalar_prefetch = 0 : i64, scratch_operands = 0 : i64, tpu.core_type = #tpu.core_type<tc>, window_params = [{transform_indices = @transform_0, window_bounds = array<i64: 2, 16, 4>}, {pipeline_mode = #tpu.pipeline_mode<synchronous>, transform_indices = @transform_1, window_bounds = array<i64: 16, 16>}, {pipeline_mode = #tpu.pipeline_mode<synchronous>, transform_indices = @transform_2, window_bounds = array<i64: 16, 1>}, {transform_indices = @transform_3, window_bounds = array<i64: 2, 8, 4>}]} {
    %c0 = arith.constant 0 : index
    %c0_0 = arith.constant 0 : index
    %0 = vector.load %arg3[%c0, %c0_0] : memref<16x16xf32, #tpu.memory_space<vmem>>, vector<16x16xf32>
    %c0_1 = arith.constant 0 : index
    %c0_2 = arith.constant 0 : index
    %1 = vector.load %arg4[%c0_1, %c0_2] : memref<16x1xf32, #tpu.memory_space<vmem>>, vector<16x1xf32>
    %c0_i32 = arith.constant 0 : i32
    %2 = arith.index_cast %c0_i32 : i32 to index
    %c0_3 = arith.constant 0 : index
    %c0_4 = arith.constant 0 : index
    %3 = vector.load %arg2[%2, %c0_3, %c0_4] : memref<2x16x4xf32, #tpu.memory_space<vmem>>, vector<1x16x4xf32>
    %4 = vector.shape_cast %3 : vector<1x16x4xf32> to vector<16x4xf32>
    %cst = arith.constant dense<0.000000e+00> : vector<16x4xf32>
    %5 = tpu.matmul %0, %4, %cst {dimension_numbers = #tpu.dot_dimension_numbers<[1], [0], [0], [1], [0, 0, 1, 1], [], []>} : vector<16x16xf32>, vector<16x4xf32>, vector<16x4xf32> -> vector<16x4xf32>
    %6 = vector.broadcast %1 : vector<16x1xf32> to vector<16x4xf32>
    %7 = arith.addf %5, %6 : vector<16x4xf32>
    %cst_5 = arith.constant 0.000000e+00 : f32
    %8 = vector.broadcast %cst_5 : f32 to vector<16x4xf32>
    %9 = arith.maximumf %7, %8 : vector<16x4xf32>
    %10 = vector.extract_strided_slice %9 {offsets = [0, 0], sizes = [8, 4], strides = [1, 1]} : vector<16x4xf32> to vector<8x4xf32>
    %11 = vector.extract_strided_slice %9 {offsets = [8, 0], sizes = [8, 4], strides = [1, 1]} : vector<16x4xf32> to vector<8x4xf32>
    %12 = arith.addf %10, %11 : vector<8x4xf32>
    %13 = arith.index_cast %c0_i32 : i32 to index
    %c0_6 = arith.constant 0 : index
    %c0_7 = arith.constant 0 : index
    %14 = vector.load %arg5[%13, %c0_6, %c0_7] : memref<2x8x4xf32, #tpu.memory_space<vmem>>, vector<1x8x4xf32>
    %15 = vector.shape_cast %14 : vector<1x8x4xf32> to vector<8x4xf32>
    %16 = vector.shape_cast %12 : vector<8x4xf32> to vector<1x8x4xf32>
    tpu.vector_store %arg5[%13, %c0_6, %c0_7], %16 {strides = array<i32>} : memref<2x8x4xf32, #tpu.memory_space<vmem>>, vector<1x8x4xf32>,
    %c1_i32 = arith.constant 1 : i32
    %17 = arith.index_cast %c1_i32 : i32 to index
    %c0_8 = arith.constant 0 : index
    %c0_9 = arith.constant 0 : index
    %18 = vector.load %arg2[%17, %c0_8, %c0_9] : memref<2x16x4xf32, #tpu.memory_space<vmem>>, vector<1x16x4xf32>
    %19 = vector.shape_cast %18 : vector<1x16x4xf32> to vector<16x4xf32>
    %cst_10 = arith.constant dense<0.000000e+00> : vector<16x4xf32>
    %20 = tpu.matmul %0, %19, %cst_10 {dimension_numbers = #tpu.dot_dimension_numbers<[1], [0], [0], [1], [0, 0, 1, 1], [], []>} : vector<16x16xf32>, vector<16x4xf32>, vector<16x4xf32> -> vector<16x4xf32>
    %21 = vector.broadcast %1 : vector<16x1xf32> to vector<16x4xf32>
    %22 = arith.addf %20, %21 : vector<16x4xf32>
    %cst_11 = arith.constant 0.000000e+00 : f32
    %23 = vector.broadcast %cst_11 : f32 to vector<16x4xf32>
    %24 = arith.maximumf %22, %23 : vector<16x4xf32>
    %25 = vector.extract_strided_slice %24 {offsets = [0, 0], sizes = [8, 4], strides = [1, 1]} : vector<16x4xf32> to vector<8x4xf32>
    %26 = vector.extract_strided_slice %24 {offsets = [8, 0], sizes = [8, 4], strides = [1, 1]} : vector<16x4xf32> to vector<8x4xf32>
    %27 = arith.addf %25, %26 : vector<8x4xf32>
    %28 = arith.index_cast %c1_i32 : i32 to index
    %c0_12 = arith.constant 0 : index
    %c0_13 = arith.constant 0 : index
    %29 = vector.load %arg5[%28, %c0_12, %c0_13] : memref<2x8x4xf32, #tpu.memory_space<vmem>>, vector<1x8x4xf32>
    %30 = vector.shape_cast %29 : vector<1x8x4xf32> to vector<8x4xf32>
    %31 = vector.shape_cast %27 : vector<8x4xf32> to vector<1x8x4xf32>
    tpu.vector_store %arg5[%28, %c0_12, %c0_13], %31 {strides = array<i32>} : memref<2x8x4xf32, #tpu.memory_space<vmem>>, vector<1x8x4xf32>,
    %c2_i32 = arith.constant 2 : i32
    return
  }
  func.func @transform_0(%arg0: i32, %arg1: i32) -> (i32, i32, i32) {
    %c0_i32 = arith.constant 0 : i32
    %c0_i32_0 = arith.constant 0 : i32
    return %arg1, %c0_i32, %arg0 : i32, i32, i32
  }
  func.func @transform_1(%arg0: i32, %arg1: i32) -> (i32, i32) {
    %c0_i32 = arith.constant 0 : i32
    %c0_i32_0 = arith.constant 0 : i32
    %c0_i32_1 = arith.constant 0 : i32
    return %c0_i32, %c0_i32_0 : i32, i32
  }
  func.func @transform_2(%arg0: i32, %arg1: i32) -> (i32, i32) {
    %c0_i32 = arith.constant 0 : i32
    %c0_i32_0 = arith.constant 0 : i32
    %c0_i32_1 = arith.constant 0 : i32
    return %c0_i32, %c0_i32_0 : i32, i32
  }
  func.func @transform_3(%arg0: i32, %arg1: i32) -> (i32, i32, i32) {
    %c0_i32 = arith.constant 0 : i32
    %c0_i32_0 = arith.constant 0 : i32
    return %arg1, %c0_i32, %arg0 : i32, i32, i32
  }
}

</mosaic_0001>

<bundles_post_ra>
// kernel: tpu_custom_call.1
= control target key start
LH: loop header
LB: loop body
LE: loop exit
PB: predicated region body
PF: predicated region fallthrough
CT: control target
= control target key end

     0   :  { %vm30_vm0 = vcmask 130048   ;;  %v243_v3 = vmov 0   ;;  %vm115_vm1 = vcmask 31744   ;;  %s298_s0 = inlined_call_operand.vmem [shape: f32[2,16,4], index: 0, kind: input, shape index: {}]   ;;  %s299_s1 = inlined_call_operand.vmem [shape: f32[16,16], index: 1, kind: input, shape index: {}]   ;;  %s300_s2 = inlined_call_operand.vmem [shape: f32[16,1], index: 2, kind: input, shape index: {}]   ;;  %s301_s3 = inlined_call_operand.vmem [shape: f32[2,8,4], index: 3, kind: output, shape index: {}]  }
   0x1   :  { %v18_v0 = vld [vmem:[%s298_s0] sm:$0xff]  ;;  %v19_v1 = vld [vmem:[%s298_s0 + $0x8] sm:$0xff]  ;;  %v206_v2 = vld [vmem:[%s298_s0 + $0x10] sm:$0xff]  ;;  %242 = vset.pattern.permute.xlu0 %v243_v3 }
   0x2   :  { %v233_v4 = vpack.c.bf16 %v19_v1, %v18_v0  ;;  %v207_v5 = vld [vmem:[%s298_s0 + $0x18] sm:$0xff]  ;;  %v14_v6 = vld [vmem:[%s299_s1] sm:$0xff]  ;;  %v15_v9 = vld [vmem:[%s299_s1 + $0x8] sm:$0xff] }
   0x3   :  { %v237_v7 = vpack.c.bf16 %v207_v5, %v206_v2  ;;  %223 = vmatprep.mubr.msk.f32.mxu0 %vm30_vm0, %v14_v6  ;;  %230 = vmatprep.mubr.msk.f32.mxu1 %vm30_vm0, %v14_v6  ;;  %v16_v8 = vld [vmem:[%s300_s2] sm:$0xff]  ;;  %v17_v10 = vld [vmem:[%s300_s2 + $0x8] sm:$0xff] }
   0x4   :  { %234 = vmatprep.subr.bf16.mxu0 %v233_v4  ;;  %22 = vperm.xlu0 %242, %v16_v8  }
   0x5   :  { %238 = vmatprep.subr.bf16.mxu1 %v237_v7  ;;  %236 = vmatpush3.bf16.msra.mxu0 %v233_v4 }
   0x6   :  { %240 = vmatpush3.bf16.msra.mxu1 %v237_v7 }
   0x8   :  { %224 = vmatmul.mubr.msk.f32.vlgmr.msra.gmra.mrb[0].mxu0 %vm30_vm0, %v15_v9  ;;  %27 = vperm.xlu0 %242, %v17_v10  }
   0x9   :  { %231 = vmatmul.mubr.msk.f32.vlgmr.msra.gmra.mrb[0].mxu1 %vm30_vm0, %v15_v9 }
  0x83   :  { %v23_v11 = vpop.permute.xlu0 %22 }
  0x87   :  { %v28_v12 = vpop.permute.xlu0 %27 }
  0xdb   :  { %v225_v13 = vpop.f32.mrb[0].mxu0 }
  0xdc   :  { %v109_v14 = vadd.f32 %v225_v13, %v28_v12  ;;  %v232_v15 = vpop.f32.mrb[0].mxu1  ;;  %v103_v16 = vpop.f32.mrb[1].mxu0 }
  0xdd   :  { %v192_v17 = vadd.f32 %v232_v15, %v28_v12  ;;  %v104_v18 = vadd.f32 %v103_v16, %v23_v11  ;;  %v186_v19 = vpop.f32.mrb[1].mxu1 }
  0xde   :  { %v113_v20 = vmax.f32 %v109_v14, 0.0  ;;  %v187_v21 = vadd.f32 %v186_v19, %v23_v11 }
  0xdf   :  { %v196_v22 = vmax.f32 %v192_v17, 0.0  ;;  %v112_v23 = vmax.f32 %v104_v18, 0.0 }
  0xe0   :  { %v195_v24 = vmax.f32 %v187_v21, 0.0 }
  0xe1   :  { %v114_v25 = vadd.f32 %v113_v20, %v112_v23 }
  0xe2   :  { %v197_v26 = vadd.f32 %v196_v22, %v195_v24 }
  0xe3   :  { %116 = vst.msk [vmem:[%s301_s3] sm:$0xff] %vm115_vm1, %v114_v25 }
  0xe4   :  { %210 = vst.msk [vmem:[%s301_s3 + $0x8] sm:$0xff] %vm115_vm1, %v197_v26 }

</bundles_post_ra>
